<compile_context>
chip_gen: v6e
topology: v6e:2x2x1
jax: 0.10.0
libtpu: 0.0.40
codegen_flags: <defaults>
</compile_context>

<pallas_src>
import jax
import jax.numpy as jnp
from jax.experimental import pallas as pl
from jax.experimental.pallas import tpu as pltpu

LANE = 128
SUBLANE = 8


def _round_up(n, m):
    return ((n + m - 1) // m) * m


def _softplus(x):
    # Numerically stable Softplus (matches torch.nn.Softplus, beta=1).
    return jnp.maximum(x, 0.0) + jnp.log1p(jnp.exp(-jnp.abs(x)))


def mlp_kernel(x_ref, w1_ref, b1_ref, w2_ref, b2_ref, w3_ref, b3_ref, o_ref):
    x = x_ref[...]                                      # (tb, K) narrow K=9

    # Layer 1: Linear + Softplus (contract over K=9; MXU pads internally)
    h1 = jnp.dot(x, w1_ref[...], preferred_element_type=jnp.float32) + b1_ref[...]
    h1 = _softplus(h1)                                  # (tb, 128) lane-dense

    # Layer 2: Linear + Softplus
    h2 = jnp.dot(h1, w2_ref[...], preferred_element_type=jnp.float32) + b2_ref[...]
    h2 = _softplus(h2)                                  # (tb, 128) lane-dense

    # Layer 3: Linear (logits, no activation) -> narrow (tb, NC) store
    out = jnp.dot(h2, w3_ref[...], preferred_element_type=jnp.float32) + b3_ref[...]
    o_ref[...] = out.astype(o_ref.dtype)


def neural_net_forward(x, params, *, block_b=2048):
    """Full forward pass of NeuralNet as a batch-gridded Pallas kernel.

    x: (B, input_size) float32
    params: dict with w1 (in,h1), b1 (1,h1), w2 (h1,h2), b2 (1,h2),
            w3 (h2,nc), b3 (1,nc)
    """
    w1, b1 = params["w1"], params["b1"]
    w2, b2 = params["w2"], params["b2"]
    w3, b3 = params["w3"], params["b3"]

    B, K = x.shape
    H1 = w1.shape[1]
    H2 = w2.shape[1]
    NC = w3.shape[1]

    # Lane-dense padding only for the hidden (VMEM-resident) feature dims.
    H1p = _round_up(H1, LANE)
    H2p = _round_up(H2, LANE)

    # Batch: pad only to a sublane multiple (8).  NO lane padding of x in HBM.
    B8 = _round_up(B, SUBLANE)
    if B8 != B:
        x = jnp.pad(x, ((0, B8 - B), (0, 0)))

    # Batch tile: big enough to amortize the ~0.35us per-step overhead, small
    # enough for every generation's default scoped VMEM (x + out tiles pad to
    # 128 lanes in VMEM: 2 tensors * 2 buffers * tb*128*4B ~= 4.3 MiB @ tb=2048).
    tb = _round_up(min(block_b, B8), SUBLANE)
    # Keep >=2 grid steps for larger batches so v7x's 2nd TensorCore gets work.
    if tb == B8 and B8 >= 4 * SUBLANE:
        tb = _round_up(pl.cdiv(B8, 2), SUBLANE)
    grid = (pl.cdiv(B8, tb),)   # ragged last block: OOB reads unused, writes masked

    # Zero-pad the tiny weights once; padded *rows* of w2/w3 are zero so the
    # softplus(0) values in padded hidden columns never reach real outputs.
    w1_p = jnp.pad(w1, ((0, 0), (0, H1p - H1)))          # (K,   H1p)
    b1_p = jnp.pad(b1, ((0, 0), (0, H1p - H1)))          # (1,   H1p)
    w2_p = jnp.pad(w2, ((0, H1p - H1), (0, H2p - H2)))   # (H1p, H2p)
    b2_p = jnp.pad(b2, ((0, 0), (0, H2p - H2)))          # (1,   H2p)
    w3_p = jnp.pad(w3, ((0, H2p - H2), (0, 0)))          # (H2p, NC) narrow cols
    b3_p = b3                                            # (1,   NC)

    # Advisory cost estimate (real math; bytes reflect the narrow HBM layout).
    flops = 2 * B * (K * H1 + H1 * H2 + H2 * NC)
    transcendentals = 2 * B * (H1 + H2)  # exp + log1p per hidden element
    bytes_accessed = 4 * (
        B8 * K + B8 * NC
        + K * H1p + H1p + H1p * H2p + H2p + H2p * NC + NC
    )

    def resident(r, c):
        # Weights/biases: same block every grid step -> stay in VMEM.
        # TODO(synk): pipeline_mode=pl.Buffered(1) on these constant blocks once
        # single-buffering is verified; double-buffered they cost only ~0.14 MiB.
        return pl.BlockSpec((r, c), lambda i: (0, 0))

    out = pl.pallas_call(
        mlp_kernel,
        out_shape=jax.ShapeDtypeStruct((B8, NC), jnp.float32),
        grid=grid,
        in_specs=[
            pl.BlockSpec((tb, K), lambda i: (i, 0)),     # x: narrow, batch-tiled
            resident(K, H1p), resident(1, H1p),          # w1, b1
            resident(H1p, H2p), resident(1, H2p),        # w2, b2
            resident(H2p, NC), resident(1, NC),          # w3, b3
        ],
        out_specs=pl.BlockSpec((tb, NC), lambda i: (i, 0)),   # narrow output
        compiler_params=pltpu.CompilerParams(
            dimension_semantics=("parallel",),
        ),
        cost_estimate=pl.CostEstimate(
            flops=flops,
            transcendentals=transcendentals,
            bytes_accessed=bytes_accessed,
        ),
    )(x, w1_p, b1_p, w2_p, b2_p, w3_p, b3_p)

    # Drop only the (at most 7) sublane-padding batch rows; no lane slice.
    return out[:B]


def init_linear_params(key, fan_in, fan_out):
    """Deterministic init mimicking nn.Linear default (uniform +/- 1/sqrt(fan_in))."""
    kw, kb = jax.random.split(key)
    bound = 1.0 / jnp.sqrt(jnp.asarray(fan_in, jnp.float32))
    w = jax.random.uniform(kw, (fan_in, fan_out), jnp.float32, -bound, bound)
    b = jax.random.uniform(kb, (1, fan_out), jnp.float32, -bound, bound)
    return w, b


def reference_forward(x, params):
    """Pure-JAX reference for correctness check."""
    h = jax.nn.softplus(x @ params["w1"] + params["b1"])
    h = jax.nn.softplus(h @ params["w2"] + params["b2"])
    return h @ params["w3"] + params["b3"]


if __name__ == "__main__":
    # Shapes consistent with the module: input_size=9, hidden=32, hidden2=16,
    # num_classes=4, batch=8.
    input_size, hidden, hidden2, num_classes = 9, 32, 16, 4
    batch = 8

    key = jax.random.PRNGKey(0)
    kx, k1, k2, k3 = jax.random.split(key, 4)

    x = jax.random.normal(kx, (batch, input_size), jnp.float32)
    w1, b1 = init_linear_params(k1, input_size, hidden)
    w2, b2 = init_linear_params(k2, hidden, hidden2)
    w3, b3 = init_linear_params(k3, hidden2, num_classes)
    params = {"w1": w1, "b1": b1, "w2": w2, "b2": b2, "w3": w3, "b3": b3}

    out = neural_net_forward(x, params)
    out = jax.block_until_ready(out)

    ref = reference_forward(x, params)
    assert out.shape == (batch, num_classes)
    assert jnp.allclose(out, ref, atol=1e-5, rtol=1e-5), "mismatch vs reference"

    print("KERNEL_OK")
</pallas_src>

<mosaic_0001>
module attributes {stable_mosaic.version = 11 : i64} {
  func.func @mlp_kernel(%arg0: i32, %arg1: memref<8x9xf32, #tpu.memory_space<vmem>>, %arg2: memref<9x128xf32, #tpu.memory_space<vmem>>, %arg3: memref<1x128xf32, #tpu.memory_space<vmem>>, %arg4: memref<128x128xf32, #tpu.memory_space<vmem>>, %arg5: memref<1x128xf32, #tpu.memory_space<vmem>>, %arg6: memref<128x4xf32, #tpu.memory_space<vmem>>, %arg7: memref<1x4xf32, #tpu.memory_space<vmem>>, %arg8: memref<8x4xf32, #tpu.memory_space<vmem>>) attributes {dimension_semantics = [#tpu.dimension_semantics<parallel>], iteration_bounds = array<i64: 1>, scalar_prefetch = 0 : i64, scratch_operands = 0 : i64, tpu.core_type = #tpu.core_type<tc>, window_params = [{transform_indices = @transform_0, window_bounds = array<i64: 8, 9>}, {pipeline_mode = #tpu.pipeline_mode<synchronous>, transform_indices = @transform_1, window_bounds = array<i64: 9, 128>}, {pipeline_mode = #tpu.pipeline_mode<synchronous>, transform_indices = @transform_2, window_bounds = array<i64: 1, 128>}, {pipeline_mode = #tpu.pipeline_mode<synchronous>, transform_indices = @transform_3, window_bounds = array<i64: 128, 128>}, {pipeline_mode = #tpu.pipeline_mode<synchronous>, transform_indices = @transform_4, window_bounds = array<i64: 1, 128>}, {pipeline_mode = #tpu.pipeline_mode<synchronous>, transform_indices = @transform_5, window_bounds = array<i64: 128, 4>}, {pipeline_mode = #tpu.pipeline_mode<synchronous>, transform_indices = @transform_6, window_bounds = array<i64: 1, 4>}, {transform_indices = @transform_7, window_bounds = array<i64: 8, 4>}]} {
    %c0 = arith.constant 0 : index
    %c0_0 = arith.constant 0 : index
    %0 = vector.load %arg1[%c0, %c0_0] : memref<8x9xf32, #tpu.memory_space<vmem>>, vector<8x9xf32>
    %c0_1 = arith.constant 0 : index
    %c0_2 = arith.constant 0 : index
    %1 = vector.load %arg2[%c0_1, %c0_2] : memref<9x128xf32, #tpu.memory_space<vmem>>, vector<9x128xf32>
    %cst = arith.constant dense<0.000000e+00> : vector<8x128xf32>
    %2 = tpu.matmul %0, %1, %cst {dimension_numbers = #tpu.dot_dimension_numbers<[1], [0], [0], [1], [0, 0, 1, 1], [], []>} : vector<8x9xf32>, vector<9x128xf32>, vector<8x128xf32> -> vector<8x128xf32>
    %c0_3 = arith.constant 0 : index
    %c0_4 = arith.constant 0 : index
    %3 = vector.load %arg3[%c0_3, %c0_4] : memref<1x128xf32, #tpu.memory_space<vmem>>, vector<1x128xf32>
    %4 = vector.broadcast %3 : vector<1x128xf32> to vector<8x128xf32>
    %5 = arith.addf %2, %4 : vector<8x128xf32>
    %cst_5 = arith.constant 0.000000e+00 : f32
    %6 = vector.broadcast %cst_5 : f32 to vector<8x128xf32>
    %7 = arith.maximumf %5, %6 : vector<8x128xf32>
    %8 = math.absf %5 : vector<8x128xf32>
    %cst_6 = arith.constant 0.000000e+00 : f32
    %9 = vector.broadcast %cst_6 : f32 to vector<8x128xf32>
    %10 = arith.subf %9, %8 : vector<8x128xf32>
    %11 = math.exp %10 : vector<8x128xf32>
    %12 = math.log1p %11 : vector<8x128xf32>
    %13 = arith.addf %7, %12 : vector<8x128xf32>
    %c0_7 = arith.constant 0 : index
    %c0_8 = arith.constant 0 : index
    %14 = vector.load %arg4[%c0_7, %c0_8] : memref<128x128xf32, #tpu.memory_space<vmem>>, vector<128x128xf32>
    %cst_9 = arith.constant dense<0.000000e+00> : vector<8x128xf32>
    %15 = tpu.matmul %13, %14, %cst_9 {dimension_numbers = #tpu.dot_dimension_numbers<[1], [0], [0], [1], [0, 0, 1, 1], [], []>} : vector<8x128xf32>, vector<128x128xf32>, vector<8x128xf32> -> vector<8x128xf32>
    %c0_10 = arith.constant 0 : index
    %c0_11 = arith.constant 0 : index
    %16 = vector.load %arg5[%c0_10, %c0_11] : memref<1x128xf32, #tpu.memory_space<vmem>>, vector<1x128xf32>
    %17 = vector.broadcast %16 : vector<1x128xf32> to vector<8x128xf32>
    %18 = arith.addf %15, %17 : vector<8x128xf32>
    %cst_12 = arith.constant 0.000000e+00 : f32
    %19 = vector.broadcast %cst_12 : f32 to vector<8x128xf32>
    %20 = arith.maximumf %18, %19 : vector<8x128xf32>
    %21 = math.absf %18 : vector<8x128xf32>
    %cst_13 = arith.constant 0.000000e+00 : f32
    %22 = vector.broadcast %cst_13 : f32 to vector<8x128xf32>
    %23 = arith.subf %22, %21 : vector<8x128xf32>
    %24 = math.exp %23 : vector<8x128xf32>
    %25 = math.log1p %24 : vector<8x128xf32>
    %26 = arith.addf %20, %25 : vector<8x128xf32>
    %c0_14 = arith.constant 0 : index
    %c0_15 = arith.constant 0 : index
    %27 = vector.load %arg6[%c0_14, %c0_15] : memref<128x4xf32, #tpu.memory_space<vmem>>, vector<128x4xf32>
    %cst_16 = arith.constant dense<0.000000e+00> : vector<8x4xf32>
    %28 = tpu.matmul %26, %27, %cst_16 {dimension_numbers = #tpu.dot_dimension_numbers<[1], [0], [0], [1], [0, 0, 1, 1], [], []>} : vector<8x128xf32>, vector<128x4xf32>, vector<8x4xf32> -> vector<8x4xf32>
    %c0_17 = arith.constant 0 : index
    %c0_18 = arith.constant 0 : index
    %29 = vector.load %arg7[%c0_17, %c0_18] : memref<1x4xf32, #tpu.memory_space<vmem>>, vector<1x4xf32>
    %30 = vector.broadcast %29 : vector<1x4xf32> to vector<8x4xf32>
    %31 = arith.addf %28, %30 : vector<8x4xf32>
    %c0_19 = arith.constant 0 : index
    %c0_20 = arith.constant 0 : index
    %32 = vector.load %arg8[%c0_19, %c0_20] : memref<8x4xf32, #tpu.memory_space<vmem>>, vector<8x4xf32>
    tpu.vector_store %arg8[%c0_19, %c0_20], %31 {strides = array<i32>} : memref<8x4xf32, #tpu.memory_space<vmem>>, vector<8x4xf32>,
    return
  }
  func.func @transform_0(%arg0: i32) -> (i32, i32) {
    %c0_i32 = arith.constant 0 : i32
    %c0_i32_0 = arith.constant 0 : i32
    return %arg0, %c0_i32 : i32, i32
  }
  func.func @transform_1(%arg0: i32) -> (i32, i32) {
    %c0_i32 = arith.constant 0 : i32
    %c0_i32_0 = arith.constant 0 : i32
    %c0_i32_1 = arith.constant 0 : i32
    return %c0_i32, %c0_i32_0 : i32, i32
  }
  func.func @transform_2(%arg0: i32) -> (i32, i32) {
    %c0_i32 = arith.constant 0 : i32
    %c0_i32_0 = arith.constant 0 : i32
    %c0_i32_1 = arith.constant 0 : i32
    return %c0_i32, %c0_i32_0 : i32, i32
  }
  func.func @transform_3(%arg0: i32) -> (i32, i32) {
    %c0_i32 = arith.constant 0 : i32
    %c0_i32_0 = arith.constant 0 : i32
    %c0_i32_1 = arith.constant 0 : i32
    return %c0_i32, %c0_i32_0 : i32, i32
  }
  func.func @transform_4(%arg0: i32) -> (i32, i32) {
    %c0_i32 = arith.constant 0 : i32
    %c0_i32_0 = arith.constant 0 : i32
    %c0_i32_1 = arith.constant 0 : i32
    return %c0_i32, %c0_i32_0 : i32, i32
  }
  func.func @transform_5(%arg0: i32) -> (i32, i32) {
    %c0_i32 = arith.constant 0 : i32
    %c0_i32_0 = arith.constant 0 : i32
    %c0_i32_1 = arith.constant 0 : i32
    return %c0_i32, %c0_i32_0 : i32, i32
  }
  func.func @transform_6(%arg0: i32) -> (i32, i32) {
    %c0_i32 = arith.constant 0 : i32
    %c0_i32_0 = arith.constant 0 : i32
    %c0_i32_1 = arith.constant 0 : i32
    return %c0_i32, %c0_i32_0 : i32, i32
  }
  func.func @transform_7(%arg0: i32) -> (i32, i32) {
    %c0_i32 = arith.constant 0 : i32
    %c0_i32_0 = arith.constant 0 : i32
    return %arg0, %c0_i32 : i32, i32
  }
}

</mosaic_0001>

<bundles_post_ra>
// kernel: tpu_custom_call.1
= control target key start
LH: loop header
LB: loop body
LE: loop exit
PB: predicated region body
PF: predicated region fallthrough
CT: control target
= control target key end

     0   :  { %12 = vsyncpa [#allocation3], 0  ;;  %s738_s0 = inlined_call_operand.vmem [shape: f32[8,9], index: 0, kind: input, shape index: {}]   ;;  %s739_s1 = inlined_call_operand.hbm [shape: f32[9,128], index: 1, kind: input, shape index: {}]   ;;  %s740_s2 = inlined_call_operand.vmem [shape: f32[1,128], index: 2, kind: input, shape index: {}]   ;;  %s741_s3 = inlined_call_operand.vmem [shape: f32[128,128], index: 3, kind: input, shape index: {}]   ;;  %s742_s4 = inlined_call_operand.hbm [shape: f32[1,128], index: 4, kind: input, shape index: {}]   ;;  %s743_s5 = inlined_call_operand.vmem [shape: f32[128,4], index: 5, kind: input, shape index: {}]   ;;  %s744_s6 = inlined_call_operand.vmem [shape: f32[1,4], index: 6, kind: input, shape index: {}]   ;;  %s745_s7 = inlined_call_operand.vmem [shape: f32[8,4], index: 7, kind: output, shape index: {}]  }
   0x1   :  { %13 = vsyncpa [#allocation5], 0  ;;  %s541_s24 = smov [#allocation2]  }
   0x2   :  { %s21_s25 = sshll.u32 %s541_s24, 4  ;;  %s22_s25 = int_to_ptr.vmem [resolvable:$true] %s21_s25 }
   0x3   :  { %s505_s26 = scalar_lea.vmem %s22_s25, 256  ;;  %p510_p1 = scmp.lt.s32.totalorder %s22_s25, %s22_s25 }
   0x4   :  { %p506_p0 = scmp.ne.s32.totalorder %s22_s25, %s505_s26  ;;  %p511_p2 = scmp.lt.s32.totalorder %s505_s26, %s505_s26 }
   0x6   :  { %p512_p3 = por %p511_p2, %p510_p1 }
   0x8   :  { %p513_p4 = pnand %p512_p3, %p506_p0 }
   0xa   :  { %516 = shalt.err (!%p513_p4)
}
   0xb   :  { %s542_s27 = smov 128   ;;  %s543_s28 = smov 8  }
   0xc   :  { %27 = dma.hbm_to_vmem [thread:$0]  %s739_s1, 256, %s22_s25, [#allocation3], %s542_s27, %s542_s27, %s543_s28  }
   0xd   :  { %s544_s8 = smov [#allocation4]  }
   0xe   :  { %s38_s9 = sshll.u32 %s544_s8, 4  ;;  %s39_s9 = int_to_ptr.vmem [resolvable:$true] %s38_s9 }
   0xf   :  { %s525_s10 = scalar_lea.vmem %s39_s9, 16  ;;  %s529_s11 = scalar_lea.vmem %s39_s9, 32 }
  0x10   :  { %p526_p5 = scmp.ne.s32.totalorder %s39_s9, %s525_s10  ;;  %p530_p6 = scmp.lt.s32.totalorder %s39_s9, %s39_s9 }
  0x11   :  { %p531_p7 = scmp.lt.s32.totalorder %s529_s11, %s525_s10 }
  0x13   :  { %p532_p8 = por %p531_p7, %p530_p6 }
  0x15   :  { %p533_p9 = pnand %p532_p8, %p526_p5 }
  0x17   :  { %536 = shalt.err (!%p533_p9)
}
  0x18   :  { %41 = dma.hbm_to_vmem [thread:$0]  %s742_s4, 16, %s39_s9, [#allocation5]  }
  0x19   :  { %537 = dma.done.wait [#allocation3], 256  }
  0x1a   :  { %538 = vsyncadd [#allocation3], 4294967040 }
  0x1b   :  { %539 = dma.done.wait [#allocation5], 16  }
  0x1c   :  { %540 = vsyncadd [#allocation5], 4294967280  ;;  %v545_v0 = vmov 0.0   ;;  %vm546_vm0 = vmmov 0   ;;  %vm66_vm1 = vcmask 1040384   ;;  %v53_v2 = vld [vmem:[#allocation2] sm:$0xff] }
  0x1d   :  { %406 = vmatprep.subr.mxu0 %v545_v0  ;;  %410 = vmatprep.mubr.msk.f32.mxu0 %vm546_vm0, %v545_v0  ;;  %v54_v1 = vld [vmem:[#allocation2 + $0x8] sm:$0x1]  ;;  %v52_v3 = vld [vmem:[%s738_s0] sm:$0xff]  ;;  %vm62_vm2 = vcmask 72704   ;;  %v170_v4 = vld [vmem:[%s741_s3 + $0x78] sm:$0xff]  ;;  %vm356_vm5 = vcmask 31744  }
  0x1e   :  { %413 = vmatprep.subr.mxu1 %v545_v0  ;;  %445 = vmatprep.mubr.msk.f32.mxu1 %vm546_vm0, %v545_v0  ;;  %v169_v5 = vld [vmem:[%s741_s3 + $0x70] sm:$0xff]  ;;  %v168_v6 = vld [vmem:[%s741_s3 + $0x68] sm:$0xff]  ;;  %v167_v7 = vld [vmem:[%s741_s3 + $0x60] sm:$0xff] }
  0x1f   :  { %407 = vmatpush3.msk.msra.mxu0 %vm66_vm1, %v54_v1  ;;  %414 = vmatpush3.msra.mxu1 %v170_v4  ;;  %v166_v8 = vld [vmem:[%s741_s3 + $0x58] sm:$0xff]  ;;  %v165_v9 = vld [vmem:[%s741_s3 + $0x50] sm:$0xff]  ;;  %v164_v10 = vld [vmem:[%s741_s3 + $0x48] sm:$0xff] }
  0x20   :  { %408 = vmatprep.subr.mxu0 %v545_v0  ;;  %415 = vmatprep.subr.mxu1 %v545_v0  ;;  %v163_v11 = vld [vmem:[%s741_s3 + $0x40] sm:$0xff]  ;;  %v162_v12 = vld [vmem:[%s741_s3 + $0x38] sm:$0xff]  ;;  %v161_v13 = vld [vmem:[%s741_s3 + $0x30] sm:$0xff] }
  0x21   :  { %409 = vmatpush3.msra.mxu0 %v53_v2  ;;  %416 = vmatpush3.msra.mxu1 %v169_v5  ;;  %v160_v14 = vld [vmem:[%s741_s3 + $0x28] sm:$0xff]  ;;  %v159_v15 = vld [vmem:[%s741_s3 + $0x20] sm:$0xff]  ;;  %v158_v16 = vld [vmem:[%s741_s3 + $0x18] sm:$0xff] }
  0x22   :  { %411 = vmatmul.mubr.msk.f32.vlgmr.msra.gmra.mxu0 %vm62_vm2, %v52_v3  ;;  %448 = vmatprep.subr.mxu0 %v545_v0  ;;  %v157_v17 = vld [vmem:[%s741_s3 + $0x10] sm:$0xff]  ;;  %v156_v18 = vld [vmem:[%s741_s3 + $0x8] sm:$0xff]  ;;  %v155_v19 = vld [vmem:[%s741_s3] sm:$0xff] }
  0x23   :  { %480 = vmatprep.mubr.msk.f32.mxu0 %vm546_vm0, %v545_v0  ;;  %417 = vmatprep.subr.mxu1 %v545_v0  ;;  %v364_v20 = vld [vmem:[%s740_s2] ss:$0 sm:$0xff]  ;;  %v278_v38 = vld [vmem:[%s743_s5 + $0x78] sm:$0xff]  ;;  %v277_v39 = vld [vmem:[%s743_s5 + $0x70] sm:$0xff] }
  0x24   :  { %418 = vmatpush3.msra.mxu1 %v168_v6  ;;  %449 = vmatpush3.msra.mxu0 %v278_v38  ;;  %v276_v40 = vld [vmem:[%s743_s5 + $0x68] sm:$0xff]  ;;  %v275_v41 = vld [vmem:[%s743_s5 + $0x60] sm:$0xff]  ;;  %v274_v42 = vld [vmem:[%s743_s5 + $0x58] sm:$0xff] }
  0x25   :  { %419 = vmatprep.subr.mxu1 %v545_v0  ;;  %450 = vmatprep.subr.mxu0 %v545_v0  ;;  %v273_v43 = vld [vmem:[%s743_s5 + $0x50] sm:$0xff]  ;;  %v272_v44 = vld [vmem:[%s743_s5 + $0x48] sm:$0xff]  ;;  %v271_v45 = vld [vmem:[%s743_s5 + $0x40] sm:$0xff] }
  0x26   :  { %420 = vmatpush3.msra.mxu1 %v167_v7  ;;  %451 = vmatpush3.msra.mxu0 %v277_v39  ;;  %v270_v46 = vld [vmem:[%s743_s5 + $0x38] sm:$0xff]  ;;  %v269_v47 = vld [vmem:[%s743_s5 + $0x30] sm:$0xff]  ;;  %v268_v48 = vld [vmem:[%s743_s5 + $0x28] sm:$0xff] }
  0x27   :  { %421 = vmatprep.subr.mxu1 %v545_v0  ;;  %452 = vmatprep.subr.mxu0 %v545_v0  ;;  %v267_v49 = vld [vmem:[%s743_s5 + $0x20] sm:$0xff]  ;;  %v266_v50 = vld [vmem:[%s743_s5 + $0x18] sm:$0xff]  ;;  %v265_v51 = vld [vmem:[%s743_s5 + $0x10] sm:$0xff] }
  0x28   :  { %422 = vmatpush3.msra.mxu1 %v166_v8  ;;  %453 = vmatpush3.msra.mxu0 %v276_v40  ;;  %v264_v52 = vld [vmem:[%s743_s5 + $0x8] sm:$0xff]  ;;  %v263_v53 = vld [vmem:[%s743_s5] sm:$0xff]  ;;  %v367_v54 = vld [vmem:[#allocation4] ss:$0 sm:$0xff] }
  0x29   :  { %423 = vmatprep.subr.mxu1 %v545_v0  ;;  %454 = vmatprep.subr.mxu0 %v545_v0  ;;  %v368_v8 = vld [vmem:[%s744_s6] ss:$0 sm:$0xff] }
  0x2a   :  { %424 = vmatpush3.msra.mxu1 %v165_v9  ;;  %455 = vmatpush3.msra.mxu0 %v275_v41 }
  0x2b   :  { %425 = vmatprep.subr.mxu1 %v545_v0  ;;  %456 = vmatprep.subr.mxu0 %v545_v0 }
  0x2c   :  { %426 = vmatpush3.msra.mxu1 %v164_v10  ;;  %457 = vmatpush3.msra.mxu0 %v274_v42 }
  0x2d   :  { %427 = vmatprep.subr.mxu1 %v545_v0  ;;  %458 = vmatprep.subr.mxu0 %v545_v0 }
  0x2e   :  { %428 = vmatpush3.msra.mxu1 %v163_v11  ;;  %459 = vmatpush3.msra.mxu0 %v273_v43 }
  0x2f   :  { %429 = vmatprep.subr.mxu1 %v545_v0  ;;  %460 = vmatprep.subr.mxu0 %v545_v0 }
  0x30   :  { %430 = vmatpush3.msra.mxu1 %v162_v12  ;;  %461 = vmatpush3.msra.mxu0 %v272_v44 }
  0x31   :  { %431 = vmatprep.subr.mxu1 %v545_v0  ;;  %462 = vmatprep.subr.mxu0 %v545_v0 }
  0x32   :  { %432 = vmatpush3.msra.mxu1 %v161_v13  ;;  %463 = vmatpush3.msra.mxu0 %v271_v45 }
  0x33   :  { %433 = vmatprep.subr.mxu1 %v545_v0  ;;  %464 = vmatprep.subr.mxu0 %v545_v0 }
  0x34   :  { %434 = vmatpush3.msra.mxu1 %v160_v14  ;;  %465 = vmatpush3.msra.mxu0 %v270_v46 }
  0x35   :  { %435 = vmatprep.subr.mxu1 %v545_v0  ;;  %466 = vmatprep.subr.mxu0 %v545_v0 }
  0x36   :  { %436 = vmatpush3.msra.mxu1 %v159_v15  ;;  %467 = vmatpush3.msra.mxu0 %v269_v47 }
  0x37   :  { %437 = vmatprep.subr.mxu1 %v545_v0  ;;  %468 = vmatprep.subr.mxu0 %v545_v0 }
  0x38   :  { %438 = vmatpush3.msra.mxu1 %v158_v16  ;;  %469 = vmatpush3.msra.mxu0 %v268_v48 }
  0x39   :  { %439 = vmatprep.subr.mxu1 %v545_v0  ;;  %470 = vmatprep.subr.mxu0 %v545_v0 }
  0x3a   :  { %440 = vmatpush3.msra.mxu1 %v157_v17  ;;  %471 = vmatpush3.msra.mxu0 %v267_v49 }
  0x3b   :  { %441 = vmatprep.subr.mxu1 %v545_v0  ;;  %472 = vmatprep.subr.mxu0 %v545_v0 }
  0x3c   :  { %442 = vmatpush3.msra.mxu1 %v156_v18  ;;  %473 = vmatpush3.msra.mxu0 %v266_v50 }
  0x3d   :  { %443 = vmatprep.subr.mxu1 %v545_v0  ;;  %474 = vmatprep.subr.mxu0 %v545_v0 }
  0x3e   :  { %444 = vmatpush3.msra.mxu1 %v155_v19  ;;  %475 = vmatpush3.msra.mxu0 %v265_v51 }
  0x3f   :  { %476 = vmatprep.subr.mxu0 %v545_v0 }
  0x40   :  { %477 = vmatpush3.msra.mxu0 %v264_v52 }
  0x41   :  { %478 = vmatprep.subr.mxu0 %v545_v0 }
  0x42   :  { %479 = vmatpush3.msra.mxu0 %v263_v53 }
  0xe2   :  { %v136_v21 = vpop.f32.mrf.mxu0 }
  0xe3   :  { %v137_v22 = vadd.f32 %v364_v20, %v136_v21 }
  0xe4   :  { %v412_v23 = vpop.f32.mrf.mxu0 }
  0xe5   :  { %v141_v24 = vand.u32 2147483647, %v137_v22  ;;  %v140_v35 = vmax.f32 %v137_v22, 0.0 }
  0xe7   :  { %v142_v25 = vsub.f32 0.0, %v141_v24 }
  0xe9   :  { %v143_v26 = vmul.f32 1.442695, %v142_v25 }
  0xeb   :  { %489 = vpow2.f32 %v143_v26 }
  0xf8   :  { %v490_v27 = vpop.eup %489 }
  0xf9   :  { %v145_v28 = vadd.f32 1.0, %v490_v27  ;;  %v148_v29 = vmul.f32 -0.5, %v490_v27  ;;  %v151_v31 = vand.u32 2147483647, %v490_v27 }
  0xfb   :  { %491 = vlog2.f32 %v145_v28  ;;  %v149_v30 = vadd.f32 1.0, %v148_v29  ;;  %vm152_vm3 = vcmp.lt.f32.partialorder %v151_v31, 0.0004427343 }
  0xfd   :  { %v150_v34 = vmul.f32 %v490_v27, %v149_v30 }
 0x108   :  { %v492_v32 = vpop.eup %491 }
 0x109   :  { %v147_v33 = vmul.f32 0.6931472, %v492_v32 }
 0x10b   :  { %v153_v36 = vsel %vm152_vm3, %v150_v34, %v147_v33 }
 0x10c   :  { %v154_v37 = vadd.f32 %v153_v36, %v140_v35 }
 0x10e   :  { %446 = vmatmul.mubr.f32.vlgmr.msra.gmra.mxu1 %v154_v37 }
 0x1ce   :  { %v244_v55 = vpop.f32.mrf.mxu1 }
 0x1cf   :  { %v245_v56 = vadd.f32 %v367_v54, %v244_v55 }
 0x1d0   :  { %v447_v57 = vpop.f32.mrf.mxu1 }
 0x1d1   :  { %v249_v58 = vand.u32 2147483647, %v245_v56  ;;  %v248_v5 = vmax.f32 %v245_v56, 0.0 }
 0x1d3   :  { %v250_v59 = vsub.f32 0.0, %v249_v58 }
 0x1d5   :  { %v251_v60 = vmul.f32 1.442695, %v250_v59 }
 0x1d7   :  { %493 = vpow2.f32 %v251_v60 }
 0x1e4   :  { %v494_v61 = vpop.eup %493 }
 0x1e5   :  { %v253_v62 = vadd.f32 1.0, %v494_v61  ;;  %v256_v63 = vmul.f32 -0.5, %v494_v61  ;;  %v259_v2 = vand.u32 2147483647, %v494_v61 }
 0x1e7   :  { %495 = vlog2.f32 %v253_v62  ;;  %v257_v1 = vadd.f32 1.0, %v256_v63  ;;  %vm260_vm4 = vcmp.lt.f32.partialorder %v259_v2, 0.0004427343 }
 0x1e9   :  { %v258_v4 = vmul.f32 %v494_v61, %v257_v1 }
 0x1f4   :  { %v496_v0 = vpop.eup %495 }
 0x1f5   :  { %v255_v3 = vmul.f32 0.6931472, %v496_v0 }
 0x1f7   :  { %v261_v6 = vsel %vm260_vm4, %v258_v4, %v255_v3 }
 0x1f8   :  { %v262_v7 = vadd.f32 %v261_v6, %v248_v5 }
 0x1fa   :  { %481 = vmatmul.mubr.f32.vlgmr.msra.gmra.mxu0 %v262_v7 }
 0x2ba   :  { %v352_v9 = vpop.f32.mrf.mxu0 }
 0x2bb   :  { %v353_v10 = vadd.f32 %v368_v8, %v352_v9 }
 0x2bc   :  { %v482_v11 = vpop.f32.mrf.mxu0 }
 0x2bd   :  { %357 = vst.msk [vmem:[%s745_s7] sm:$0xff] %vm356_vm5, %v353_v10 }
 0x2be   :  { %362 = vsyncpa [#allocation3], 1 }
 0x2bf   :  { %363 = vsyncpa [#allocation5], 1 }

</bundles_post_ra>
